<compile_context>
chip_gen: v7x
topology: tpu7x:2x2x1
jax: 0.10.0
libtpu: 0.0.40
codegen_flags: <defaults>
</compile_context>

<pallas_src>
import jax
import jax.numpy as jnp
from jax.experimental import pallas as pl
from jax.experimental.pallas import tpu as pltpu


# ------------------------------ Pallas kernels ------------------------------

def _make_chain_kernel(num_steps, cout):
    """Builds the kernel for the whole top-down chain (num_steps = L - 1 >= 1).

    Ref order:
      xs:       x_{L-1}, x_{L-2}, ..., x_0          (num_steps + 1 per-batch blocks,
                                                      spatially flattened (1, C, H*W))
      per step: a, bpre, wct, bout, scat            (5 full-block weight refs each)
      o_ref:    finest-level output (1, Cout, H0*W0)
    """
    n_x = num_steps + 1

    def kernel(*refs):
        x_refs = refs[:n_x]
        w_refs = refs[n_x:n_x + 5 * num_steps]
        o_ref = refs[n_x + 5 * num_steps]

        # Raw coarsest level; its lateral 1x1 conv is folded into step 0's A.
        cur = x_refs[0][0]                                        # (C_last, Sc0)

        for t in range(num_steps):
            a_ref, bpre_ref, wct_ref, bout_ref, scat_ref = w_refs[5 * t:5 * t + 5]
            x_ref = x_refs[t + 1]

            # Deconv over ALL coarse rows at once: (4*Cout, Cprev) @ (Cprev, Hc*Wc).
            d = (jnp.dot(a_ref[...], cur, preferred_element_type=jnp.float32)
                 + bpre_ref[...])                                 # (4*Cout, Sc)

            # Stride-2 (kh, kw) interleave via precomputed one-hot scatters:
            # row block j = 2*kh + kw;  scat[j]: (Sc, 4*Sc).  Lane dim = H*W.
            dec = jnp.dot(d[0 * cout:1 * cout], scat_ref[0],
                          preferred_element_type=jnp.float32)     # (Cout, S)
            for j in range(1, 4):
                dec = dec + jnp.dot(d[j * cout:(j + 1) * cout], scat_ref[j],
                                    preferred_element_type=jnp.float32)

            # Lateral 1x1 conv, hoisted: one lane-dense matmul over H*W.
            lat = jnp.dot(wct_ref[...], x_ref[0],
                          preferred_element_type=jnp.float32)     # (Cout, S)

            cur = dec + lat + bout_ref[...]                       # (Cout, S)

        o_ref[0] = cur                                            # one dense store

    return kernel


def _lateral_kernel(x_ref, wct_ref, b_ref, o_ref):
    # Degenerate L == 1 case: a single lateral 1x1 conv.
    o_ref[0] = (jnp.dot(wct_ref[...], x_ref[0], preferred_element_type=jnp.float32)
                + b_ref[...])


# ----------------------------- layer wrappers --------------------------------

def _const_index_map(ndim):
    zeros = (0,) * ndim
    return lambda b, _z=zeros: _z


def _lateral_only(x, wct, b_col):
    B, Cin, H, W = x.shape
    Cout = wct.shape[0]
    xf = x.reshape(B, Cin, H * W)                # free XLA reshape of contiguous NCHW
    out = pl.pallas_call(
        _lateral_kernel,
        out_shape=jax.ShapeDtypeStruct((B, Cout, H * W), jnp.float32),
        grid=(B,),
        in_specs=[pl.BlockSpec((1, Cin, H * W), lambda b: (b, 0, 0)),
                  pl.BlockSpec((Cout, Cin), lambda b: (0, 0)),
                  pl.BlockSpec((Cout, 1), lambda b: (0, 0))],
        out_specs=pl.BlockSpec((1, Cout, H * W), lambda b: (b, 0, 0)),
        compiler_params=pltpu.CompilerParams(dimension_semantics=("parallel",)),
    )(xf, wct, b_col)
    return out.reshape(B, Cout, H, W)


def upsample_fuse_forward(xs_nchw, params):
    """Pallas forward. xs_nchw: list of NCHW arrays (fine -> coarse)."""
    L = params["L"]
    Cout = params["Cout"]
    B, _, H0, W0 = xs_nchw[0].shape

    if L == 1:
        return _lateral_only(xs_nchw[0], params["wct0"], params["bc0"])

    num_steps = L - 1
    # Flatten spatial dims outside the kernel (free reshape of contiguous NCHW).
    xs_flat = [x.reshape(x.shape[0], x.shape[1], x.shape[2] * x.shape[3])
               for x in xs_nchw]

    operands = []
    in_specs = []
    # x operands, coarsest first (matches the kernel's step order).
    for lvl in [L - 1] + list(range(L - 2, -1, -1)):
        xf = xs_flat[lvl]
        operands.append(xf)
        in_specs.append(pl.BlockSpec((1,) + xf.shape[1:], lambda b: (b, 0, 0)))
    # Per-step weights / biases / scatter matrices (constant index_map -> resident).
    for step in params["steps"]:
        for name in ("a", "bpre", "wct", "bout", "scat"):
            arr = step[name]
            operands.append(arr)
            in_specs.append(pl.BlockSpec(arr.shape, _const_index_map(arr.ndim)))

    out_flat = pl.pallas_call(
        _make_chain_kernel(num_steps, Cout),
        out_shape=jax.ShapeDtypeStruct((B, Cout, H0 * W0), jnp.float32),
        grid=(B,),
        in_specs=in_specs,
        out_specs=pl.BlockSpec((1, Cout, H0 * W0), lambda b: (b, 0, 0)),
        compiler_params=pltpu.CompilerParams(dimension_semantics=("parallel",)),
    )(*operands)
    return out_flat.reshape(B, Cout, H0, W0)


# ------------------------ parameter folding / forward ------------------------

def _make_scatter(Hc, Wc):
    """(4, Hc*Wc, 4*Hc*Wc) one-hot scatters; block j = 2*kh + kw maps coarse pixel
    (h, w) to fine pixel (2h+kh, 2w+kw) in the flattened (H*W) layout."""
    Sc = Hc * Wc
    Wf = 2 * Wc
    S = 4 * Sc
    src = jnp.arange(Sc)
    h, w = src // Wc, src % Wc
    cols = jnp.arange(S)[None, :]
    mats = []
    for kh in range(2):
        for kw in range(2):
            dst = (2 * h + kh) * Wf + (2 * w + kw)
            mats.append((dst[:, None] == cols).astype(jnp.float32))
    return jnp.stack(mats, axis=0)


def prepare_params(torch_params, spatial_hw):
    """Fold PyTorch-layout weights into the matmul-friendly per-step layouts.

    spatial_hw: list of (H_i, W_i) per level, fine -> coarse (same order as x).
    """
    conv_w = torch_params["conv_w"]      # list of (Cout, Cin_i, 1, 1)
    conv_b = torch_params["conv_b"]      # list of (Cout,)
    deconv_w = torch_params["deconv_w"]  # list of (Cin=Cout, Cout, 2, 2)
    deconv_b = torch_params["deconv_b"]  # list of (Cout,)
    L = len(conv_w)
    Cout = conv_w[0].shape[0]

    wct = [w[:, :, 0, 0].astype(jnp.float32) for w in conv_w]   # (Cout, Cin_i)
    bc = [b.astype(jnp.float32) for b in conv_b]

    params = {"L": L, "Cout": Cout,
              "wct0": wct[0], "bc0": bc[0].reshape(Cout, 1), "steps": []}
    for i in range(L - 2, -1, -1):
        wd = deconv_w[i].astype(jnp.float32)                      # (c', o, kh, kw)
        # rows ordered (kh, kw, o), cols = input channel c' of `cur`
        wd_all = jnp.transpose(wd, (2, 3, 1, 0)).reshape(4 * Cout, Cout)
        if i == L - 2:
            # Fold the coarsest level's lateral 1x1 conv into the deconv.
            a = wd_all @ wct[L - 1]                               # (4*Cout, Cin_last)
            bpre = (wd_all @ bc[L - 1]).reshape(4 * Cout, 1)
        else:
            a = wd_all                                            # (4*Cout, Cout)
            bpre = jnp.zeros((4 * Cout, 1), jnp.float32)
        Hc, Wc = spatial_hw[i + 1]
        assert spatial_hw[i] == (2 * Hc, 2 * Wc), (spatial_hw[i], (Hc, Wc))
        params["steps"].append({
            "a": a,
            "bpre": bpre,
            "wct": wct[i],
            "bout": (bc[i] + deconv_b[i].astype(jnp.float32)).reshape(Cout, 1),
            "scat": _make_scatter(Hc, Wc),
        })
    return params


# ------------------------ pure-JAX reference (NCHW) ---------------------------

def reference_forward(xs_nchw, torch_params):
    L = len(xs_nchw)
    tmp = []
    for i in range(L):
        w = torch_params["conv_w"][i]            # (Cout, Cin, 1, 1)
        b = torch_params["conv_b"][i]
        t = jnp.einsum("bchw,oc->bohw", xs_nchw[i], w[:, :, 0, 0])
        tmp.append(t + b[None, :, None, None])
    cur = tmp[-1]
    for i in range(L - 2, -1, -1):
        W = torch_params["deconv_w"][i]          # (Cin, Cout, 2, 2)
        b = torch_params["deconv_b"][i]
        B, _, H, Wd = cur.shape
        Co = W.shape[1]
        t = jnp.einsum("bihw,iokl->bohkwl", cur, W).reshape(B, Co, 2 * H, 2 * Wd)
        cur = t + b[None, :, None, None] + tmp[i]
    return cur


# ----------------------------------- main -------------------------------------

if __name__ == "__main__":
    key = jax.random.PRNGKey(0)

    # Pyramid configuration (small, synthetic):
    B = 2
    in_channels = [4, 8, 16]        # per-level input channels (fine -> coarse)
    spatial = [16, 8, 4]            # per-level H=W (halved each level)
    Cout = 8                        # common fused channel count
    L = len(in_channels)

    # Deterministic parameter init in PyTorch layouts.
    torch_params = {"conv_w": [], "conv_b": [], "deconv_w": [], "deconv_b": []}
    k = key
    for i in range(L):
        k, k1, k2 = jax.random.split(k, 3)
        torch_params["conv_w"].append(
            0.1 * jax.random.normal(k1, (Cout, in_channels[i], 1, 1), jnp.float32))
        torch_params["conv_b"].append(
            0.1 * jax.random.normal(k2, (Cout,), jnp.float32))
    for i in range(L - 1):
        k, k1, k2 = jax.random.split(k, 3)
        torch_params["deconv_w"].append(
            0.1 * jax.random.normal(k1, (Cout, Cout, 2, 2), jnp.float32))
        torch_params["deconv_b"].append(
            0.1 * jax.random.normal(k2, (Cout,), jnp.float32))

    # Inputs (NCHW, like PyTorch).
    xs = []
    for i in range(L):
        k, ki = jax.random.split(k)
        xs.append(jax.random.normal(
            ki, (B, in_channels[i], spatial[i], spatial[i]), jnp.float32))

    spatial_hw = [(s, s) for s in spatial]
    params = prepare_params(torch_params, spatial_hw)
    out = upsample_fuse_forward(xs, params)
    out = jax.block_until_ready(out)

    ref = reference_forward(xs, torch_params)
    assert out.shape == (B, Cout, spatial[0], spatial[0]), out.shape
    assert jnp.allclose(out, ref, atol=2e-4, rtol=2e-4), \
        float(jnp.max(jnp.abs(out - ref)))

    print("KERNEL_OK")
</pallas_src>

<mosaic_0001>
module attributes {stable_mosaic.version = 11 : i64} {
  func.func @kernel(%arg0: i32, %arg1: memref<1x16x16xf32, #tpu.memory_space<vmem>>, %arg2: memref<1x8x64xf32, #tpu.memory_space<vmem>>, %arg3: memref<1x4x256xf32, #tpu.memory_space<vmem>>, %arg4: memref<32x16xf32, #tpu.memory_space<vmem>>, %arg5: memref<32x1xf32, #tpu.memory_space<vmem>>, %arg6: memref<8x8xf32, #tpu.memory_space<vmem>>, %arg7: memref<8x1xf32, #tpu.memory_space<vmem>>, %arg8: memref<4x16x64xf32, #tpu.memory_space<vmem>>, %arg9: memref<32x8xf32, #tpu.memory_space<vmem>>, %arg10: memref<32x1xf32, #tpu.memory_space<vmem>>, %arg11: memref<8x4xf32, #tpu.memory_space<vmem>>, %arg12: memref<8x1xf32, #tpu.memory_space<vmem>>, %arg13: memref<4x64x256xf32, #tpu.memory_space<vmem>>, %arg14: memref<1x8x256xf32, #tpu.memory_space<vmem>>) attributes {dimension_semantics = [#tpu.dimension_semantics<parallel>], iteration_bounds = array<i64: 2>, scalar_prefetch = 0 : i64, scratch_operands = 0 : i64, tpu.core_type = #tpu.core_type<tc>, window_params = [{transform_indices = @transform_0, window_bounds = array<i64: 1, 16, 16>}, {transform_indices = @transform_1, window_bounds = array<i64: 1, 8, 64>}, {transform_indices = @transform_2, window_bounds = array<i64: 1, 4, 256>}, {pipeline_mode = #tpu.pipeline_mode<synchronous>, transform_indices = @transform_3, window_bounds = array<i64: 32, 16>}, {pipeline_mode = #tpu.pipeline_mode<synchronous>, transform_indices = @transform_4, window_bounds = array<i64: 32, 1>}, {pipeline_mode = #tpu.pipeline_mode<synchronous>, transform_indices = @transform_5, window_bounds = array<i64: 8, 8>}, {pipeline_mode = #tpu.pipeline_mode<synchronous>, transform_indices = @transform_6, window_bounds = array<i64: 8, 1>}, {pipeline_mode = #tpu.pipeline_mode<synchronous>, transform_indices = @transform_7, window_bounds = array<i64: 4, 16, 64>}, {pipeline_mode = #tpu.pipeline_mode<synchronous>, transform_indices = @transform_8, window_bounds = array<i64: 32, 8>}, {pipeline_mode = #tpu.pipeline_mode<synchronous>, transform_indices = @transform_9, window_bounds = array<i64: 32, 1>}, {pipeline_mode = #tpu.pipeline_mode<synchronous>, transform_indices = @transform_10, window_bounds = array<i64: 8, 4>}, {pipeline_mode = #tpu.pipeline_mode<synchronous>, transform_indices = @transform_11, window_bounds = array<i64: 8, 1>}, {pipeline_mode = #tpu.pipeline_mode<synchronous>, transform_indices = @transform_12, window_bounds = array<i64: 4, 64, 256>}, {transform_indices = @transform_13, window_bounds = array<i64: 1, 8, 256>}]} {
    %c0 = arith.constant 0 : index
    %c0_0 = arith.constant 0 : index
    %c0_1 = arith.constant 0 : index
    %0 = vector.load %arg1[%c0, %c0_0, %c0_1] : memref<1x16x16xf32, #tpu.memory_space<vmem>>, vector<1x16x16xf32>
    %1 = vector.shape_cast %0 : vector<1x16x16xf32> to vector<16x16xf32>
    %c0_2 = arith.constant 0 : index
    %c0_3 = arith.constant 0 : index
    %2 = vector.load %arg4[%c0_2, %c0_3] : memref<32x16xf32, #tpu.memory_space<vmem>>, vector<32x16xf32>
    %cst = arith.constant dense<0.000000e+00> : vector<32x16xf32>
    %3 = tpu.matmul %2, %1, %cst {dimension_numbers = #tpu.dot_dimension_numbers<[1], [0], [0], [1], [0, 0, 1, 1], [], []>} : vector<32x16xf32>, vector<16x16xf32>, vector<32x16xf32> -> vector<32x16xf32>
    %c0_4 = arith.constant 0 : index
    %c0_5 = arith.constant 0 : index
    %4 = vector.load %arg5[%c0_4, %c0_5] : memref<32x1xf32, #tpu.memory_space<vmem>>, vector<32x1xf32>
    %5 = vector.broadcast %4 : vector<32x1xf32> to vector<32x16xf32>
    %6 = arith.addf %3, %5 : vector<32x16xf32>
    %7 = vector.extract_strided_slice %6 {offsets = [0, 0], sizes = [8, 16], strides = [1, 1]} : vector<32x16xf32> to vector<8x16xf32>
    %c0_6 = arith.constant 0 : index
    %c0_7 = arith.constant 0 : index
    %c0_8 = arith.constant 0 : index
    %8 = vector.load %arg8[%c0_6, %c0_7, %c0_8] : memref<4x16x64xf32, #tpu.memory_space<vmem>>, vector<1x16x64xf32>
    %9 = vector.shape_cast %8 : vector<1x16x64xf32> to vector<16x64xf32>
    %cst_9 = arith.constant dense<0.000000e+00> : vector<8x64xf32>
    %10 = tpu.matmul %7, %9, %cst_9 {dimension_numbers = #tpu.dot_dimension_numbers<[1], [0], [0], [1], [0, 0, 1, 1], [], []>} : vector<8x16xf32>, vector<16x64xf32>, vector<8x64xf32> -> vector<8x64xf32>
    %11 = vector.extract_strided_slice %6 {offsets = [8, 0], sizes = [8, 16], strides = [1, 1]} : vector<32x16xf32> to vector<8x16xf32>
    %c1 = arith.constant 1 : index
    %c0_10 = arith.constant 0 : index
    %c0_11 = arith.constant 0 : index
    %12 = vector.load %arg8[%c1, %c0_10, %c0_11] : memref<4x16x64xf32, #tpu.memory_space<vmem>>, vector<1x16x64xf32>
    %13 = vector.shape_cast %12 : vector<1x16x64xf32> to vector<16x64xf32>
    %cst_12 = arith.constant dense<0.000000e+00> : vector<8x64xf32>
    %14 = tpu.matmul %11, %13, %cst_12 {dimension_numbers = #tpu.dot_dimension_numbers<[1], [0], [0], [1], [0, 0, 1, 1], [], []>} : vector<8x16xf32>, vector<16x64xf32>, vector<8x64xf32> -> vector<8x64xf32>
    %15 = arith.addf %10, %14 : vector<8x64xf32>
    %16 = vector.extract_strided_slice %6 {offsets = [16, 0], sizes = [8, 16], strides = [1, 1]} : vector<32x16xf32> to vector<8x16xf32>
    %c2 = arith.constant 2 : index
    %c0_13 = arith.constant 0 : index
    %c0_14 = arith.constant 0 : index
    %17 = vector.load %arg8[%c2, %c0_13, %c0_14] : memref<4x16x64xf32, #tpu.memory_space<vmem>>, vector<1x16x64xf32>
    %18 = vector.shape_cast %17 : vector<1x16x64xf32> to vector<16x64xf32>
    %cst_15 = arith.constant dense<0.000000e+00> : vector<8x64xf32>
    %19 = tpu.matmul %16, %18, %cst_15 {dimension_numbers = #tpu.dot_dimension_numbers<[1], [0], [0], [1], [0, 0, 1, 1], [], []>} : vector<8x16xf32>, vector<16x64xf32>, vector<8x64xf32> -> vector<8x64xf32>
    %20 = arith.addf %15, %19 : vector<8x64xf32>
    %21 = vector.extract_strided_slice %6 {offsets = [24, 0], sizes = [8, 16], strides = [1, 1]} : vector<32x16xf32> to vector<8x16xf32>
    %c3 = arith.constant 3 : index
    %c0_16 = arith.constant 0 : index
    %c0_17 = arith.constant 0 : index
    %22 = vector.load %arg8[%c3, %c0_16, %c0_17] : memref<4x16x64xf32, #tpu.memory_space<vmem>>, vector<1x16x64xf32>
    %23 = vector.shape_cast %22 : vector<1x16x64xf32> to vector<16x64xf32>
    %cst_18 = arith.constant dense<0.000000e+00> : vector<8x64xf32>
    %24 = tpu.matmul %21, %23, %cst_18 {dimension_numbers = #tpu.dot_dimension_numbers<[1], [0], [0], [1], [0, 0, 1, 1], [], []>} : vector<8x16xf32>, vector<16x64xf32>, vector<8x64xf32> -> vector<8x64xf32>
    %25 = arith.addf %20, %24 : vector<8x64xf32>
    %c0_19 = arith.constant 0 : index
    %c0_20 = arith.constant 0 : index
    %26 = vector.load %arg6[%c0_19, %c0_20] : memref<8x8xf32, #tpu.memory_space<vmem>>, vector<8x8xf32>
    %c0_21 = arith.constant 0 : index
    %c0_22 = arith.constant 0 : index
    %c0_23 = arith.constant 0 : index
    %27 = vector.load %arg2[%c0_21, %c0_22, %c0_23] : memref<1x8x64xf32, #tpu.memory_space<vmem>>, vector<1x8x64xf32>
    %28 = vector.shape_cast %27 : vector<1x8x64xf32> to vector<8x64xf32>
    %cst_24 = arith.constant dense<0.000000e+00> : vector<8x64xf32>
    %29 = tpu.matmul %26, %28, %cst_24 {dimension_numbers = #tpu.dot_dimension_numbers<[1], [0], [0], [1], [0, 0, 1, 1], [], []>} : vector<8x8xf32>, vector<8x64xf32>, vector<8x64xf32> -> vector<8x64xf32>
    %30 = arith.addf %25, %29 : vector<8x64xf32>
    %c0_25 = arith.constant 0 : index
    %c0_26 = arith.constant 0 : index
    %31 = vector.load %arg7[%c0_25, %c0_26] : memref<8x1xf32, #tpu.memory_space<vmem>>, vector<8x1xf32>
    %32 = vector.broadcast %31 : vector<8x1xf32> to vector<8x64xf32>
    %33 = arith.addf %30, %32 : vector<8x64xf32>
    %c0_27 = arith.constant 0 : index
    %c0_28 = arith.constant 0 : index
    %34 = vector.load %arg9[%c0_27, %c0_28] : memref<32x8xf32, #tpu.memory_space<vmem>>, vector<32x8xf32>
    %cst_29 = arith.constant dense<0.000000e+00> : vector<32x64xf32>
    %35 = tpu.matmul %34, %33, %cst_29 {dimension_numbers = #tpu.dot_dimension_numbers<[1], [0], [0], [1], [0, 0, 1, 1], [], []>} : vector<32x8xf32>, vector<8x64xf32>, vector<32x64xf32> -> vector<32x64xf32>
    %c0_30 = arith.constant 0 : index
    %c0_31 = arith.constant 0 : index
    %36 = vector.load %arg10[%c0_30, %c0_31] : memref<32x1xf32, #tpu.memory_space<vmem>>, vector<32x1xf32>
    %37 = vector.broadcast %36 : vector<32x1xf32> to vector<32x64xf32>
    %38 = arith.addf %35, %37 : vector<32x64xf32>
    %39 = vector.extract_strided_slice %38 {offsets = [0, 0], sizes = [8, 64], strides = [1, 1]} : vector<32x64xf32> to vector<8x64xf32>
    %c0_32 = arith.constant 0 : index
    %c0_33 = arith.constant 0 : index
    %c0_34 = arith.constant 0 : index
    %40 = vector.load %arg13[%c0_32, %c0_33, %c0_34] : memref<4x64x256xf32, #tpu.memory_space<vmem>>, vector<1x64x256xf32>
    %41 = vector.shape_cast %40 : vector<1x64x256xf32> to vector<64x256xf32>
    %cst_35 = arith.constant dense<0.000000e+00> : vector<8x256xf32>
    %42 = tpu.matmul %39, %41, %cst_35 {dimension_numbers = #tpu.dot_dimension_numbers<[1], [0], [0], [1], [0, 0, 1, 1], [], []>} : vector<8x64xf32>, vector<64x256xf32>, vector<8x256xf32> -> vector<8x256xf32>
    %43 = vector.extract_strided_slice %38 {offsets = [8, 0], sizes = [8, 64], strides = [1, 1]} : vector<32x64xf32> to vector<8x64xf32>
    %c1_36 = arith.constant 1 : index
    %c0_37 = arith.constant 0 : index
    %c0_38 = arith.constant 0 : index
    %44 = vector.load %arg13[%c1_36, %c0_37, %c0_38] : memref<4x64x256xf32, #tpu.memory_space<vmem>>, vector<1x64x256xf32>
    %45 = vector.shape_cast %44 : vector<1x64x256xf32> to vector<64x256xf32>
    %cst_39 = arith.constant dense<0.000000e+00> : vector<8x256xf32>
    %46 = tpu.matmul %43, %45, %cst_39 {dimension_numbers = #tpu.dot_dimension_numbers<[1], [0], [0], [1], [0, 0, 1, 1], [], []>} : vector<8x64xf32>, vector<64x256xf32>, vector<8x256xf32> -> vector<8x256xf32>
    %47 = arith.addf %42, %46 : vector<8x256xf32>
    %48 = vector.extract_strided_slice %38 {offsets = [16, 0], sizes = [8, 64], strides = [1, 1]} : vector<32x64xf32> to vector<8x64xf32>
    %c2_40 = arith.constant 2 : index
    %c0_41 = arith.constant 0 : index
    %c0_42 = arith.constant 0 : index
    %49 = vector.load %arg13[%c2_40, %c0_41, %c0_42] : memref<4x64x256xf32, #tpu.memory_space<vmem>>, vector<1x64x256xf32>
    %50 = vector.shape_cast %49 : vector<1x64x256xf32> to vector<64x256xf32>
    %cst_43 = arith.constant dense<0.000000e+00> : vector<8x256xf32>
    %51 = tpu.matmul %48, %50, %cst_43 {dimension_numbers = #tpu.dot_dimension_numbers<[1], [0], [0], [1], [0, 0, 1, 1], [], []>} : vector<8x64xf32>, vector<64x256xf32>, vector<8x256xf32> -> vector<8x256xf32>
    %52 = arith.addf %47, %51 : vector<8x256xf32>
    %53 = vector.extract_strided_slice %38 {offsets = [24, 0], sizes = [8, 64], strides = [1, 1]} : vector<32x64xf32> to vector<8x64xf32>
    %c3_44 = arith.constant 3 : index
    %c0_45 = arith.constant 0 : index
    %c0_46 = arith.constant 0 : index
    %54 = vector.load %arg13[%c3_44, %c0_45, %c0_46] : memref<4x64x256xf32, #tpu.memory_space<vmem>>, vector<1x64x256xf32>
    %55 = vector.shape_cast %54 : vector<1x64x256xf32> to vector<64x256xf32>
    %cst_47 = arith.constant dense<0.000000e+00> : vector<8x256xf32>
    %56 = tpu.matmul %53, %55, %cst_47 {dimension_numbers = #tpu.dot_dimension_numbers<[1], [0], [0], [1], [0, 0, 1, 1], [], []>} : vector<8x64xf32>, vector<64x256xf32>, vector<8x256xf32> -> vector<8x256xf32>
    %57 = arith.addf %52, %56 : vector<8x256xf32>
    %c0_48 = arith.constant 0 : index
    %c0_49 = arith.constant 0 : index
    %58 = vector.load %arg11[%c0_48, %c0_49] : memref<8x4xf32, #tpu.memory_space<vmem>>, vector<8x4xf32>
    %c0_50 = arith.constant 0 : index
    %c0_51 = arith.constant 0 : index
    %c0_52 = arith.constant 0 : index
    %59 = vector.load %arg3[%c0_50, %c0_51, %c0_52] : memref<1x4x256xf32, #tpu.memory_space<vmem>>, vector<1x4x256xf32>
    %60 = vector.shape_cast %59 : vector<1x4x256xf32> to vector<4x256xf32>
    %cst_53 = arith.constant dense<0.000000e+00> : vector<8x256xf32>
    %61 = tpu.matmul %58, %60, %cst_53 {dimension_numbers = #tpu.dot_dimension_numbers<[1], [0], [0], [1], [0, 0, 1, 1], [], []>} : vector<8x4xf32>, vector<4x256xf32>, vector<8x256xf32> -> vector<8x256xf32>
    %62 = arith.addf %57, %61 : vector<8x256xf32>
    %c0_54 = arith.constant 0 : index
    %c0_55 = arith.constant 0 : index
    %63 = vector.load %arg12[%c0_54, %c0_55] : memref<8x1xf32, #tpu.memory_space<vmem>>, vector<8x1xf32>
    %64 = vector.broadcast %63 : vector<8x1xf32> to vector<8x256xf32>
    %65 = arith.addf %62, %64 : vector<8x256xf32>
    %c0_56 = arith.constant 0 : index
    %c0_57 = arith.constant 0 : index
    %c0_58 = arith.constant 0 : index
    %66 = vector.load %arg14[%c0_56, %c0_57, %c0_58] : memref<1x8x256xf32, #tpu.memory_space<vmem>>, vector<1x8x256xf32>
    %67 = vector.shape_cast %66 : vector<1x8x256xf32> to vector<8x256xf32>
    %68 = vector.shape_cast %65 : vector<8x256xf32> to vector<1x8x256xf32>
    tpu.vector_store %arg14[%c0_56, %c0_57, %c0_58], %68 {strides = array<i32>} : memref<1x8x256xf32, #tpu.memory_space<vmem>>, vector<1x8x256xf32>,
    return
  }
  func.func @transform_0(%arg0: i32) -> (i32, i32, i32) {
    %c0_i32 = arith.constant 0 : i32
    %c0_i32_0 = arith.constant 0 : i32
    %c0_i32_1 = arith.constant 0 : i32
    return %arg0, %c0_i32, %c0_i32_0 : i32, i32, i32
  }
  func.func @transform_1(%arg0: i32) -> (i32, i32, i32) {
    %c0_i32 = arith.constant 0 : i32
    %c0_i32_0 = arith.constant 0 : i32
    %c0_i32_1 = arith.constant 0 : i32
    return %arg0, %c0_i32, %c0_i32_0 : i32, i32, i32
  }
  func.func @transform_2(%arg0: i32) -> (i32, i32, i32) {
    %c0_i32 = arith.constant 0 : i32
    %c0_i32_0 = arith.constant 0 : i32
    %c0_i32_1 = arith.constant 0 : i32
    return %arg0, %c0_i32, %c0_i32_0 : i32, i32, i32
  }
  func.func @transform_3(%arg0: i32) -> (i32, i32) {
    %c0_i32 = arith.constant 0 : i32
    %c0_i32_0 = arith.constant 0 : i32
    %c0_i32_1 = arith.constant 0 : i32
    return %c0_i32, %c0_i32_0 : i32, i32
  }
  func.func @transform_4(%arg0: i32) -> (i32, i32) {
    %c0_i32 = arith.constant 0 : i32
    %c0_i32_0 = arith.constant 0 : i32
    %c0_i32_1 = arith.constant 0 : i32
    return %c0_i32, %c0_i32_0 : i32, i32
  }
  func.func @transform_5(%arg0: i32) -> (i32, i32) {
    %c0_i32 = arith.constant 0 : i32
    %c0_i32_0 = arith.constant 0 : i32
    %c0_i32_1 = arith.constant 0 : i32
    return %c0_i32, %c0_i32_0 : i32, i32
  }
  func.func @transform_6(%arg0: i32) -> (i32, i32) {
    %c0_i32 = arith.constant 0 : i32
    %c0_i32_0 = arith.constant 0 : i32
    %c0_i32_1 = arith.constant 0 : i32
    return %c0_i32, %c0_i32_0 : i32, i32
  }
  func.func @transform_7(%arg0: i32) -> (i32, i32, i32) {
    %c0_i32 = arith.constant 0 : i32
    %c0_i32_0 = arith.constant 0 : i32
    %c0_i32_1 = arith.constant 0 : i32
    %c0_i32_2 = arith.constant 0 : i32
    return %c0_i32, %c0_i32_0, %c0_i32_1 : i32, i32, i32
  }
  func.func @transform_8(%arg0: i32) -> (i32, i32) {
    %c0_i32 = arith.constant 0 : i32
    %c0_i32_0 = arith.constant 0 : i32
    %c0_i32_1 = arith.constant 0 : i32
    return %c0_i32, %c0_i32_0 : i32, i32
  }
  func.func @transform_9(%arg0: i32) -> (i32, i32) {
    %c0_i32 = arith.constant 0 : i32
    %c0_i32_0 = arith.constant 0 : i32
    %c0_i32_1 = arith.constant 0 : i32
    return %c0_i32, %c0_i32_0 : i32, i32
  }
  func.func @transform_10(%arg0: i32) -> (i32, i32) {
    %c0_i32 = arith.constant 0 : i32
    %c0_i32_0 = arith.constant 0 : i32
    %c0_i32_1 = arith.constant 0 : i32
    return %c0_i32, %c0_i32_0 : i32, i32
  }
  func.func @transform_11(%arg0: i32) -> (i32, i32) {
    %c0_i32 = arith.constant 0 : i32
    %c0_i32_0 = arith.constant 0 : i32
    %c0_i32_1 = arith.constant 0 : i32
    return %c0_i32, %c0_i32_0 : i32, i32
  }
  func.func @transform_12(%arg0: i32) -> (i32, i32, i32) {
    %c0_i32 = arith.constant 0 : i32
    %c0_i32_0 = arith.constant 0 : i32
    %c0_i32_1 = arith.constant 0 : i32
    %c0_i32_2 = arith.constant 0 : i32
    return %c0_i32, %c0_i32_0, %c0_i32_1 : i32, i32, i32
  }
  func.func @transform_13(%arg0: i32) -> (i32, i32, i32) {
    %c0_i32 = arith.constant 0 : i32
    %c0_i32_0 = arith.constant 0 : i32
    %c0_i32_1 = arith.constant 0 : i32
    return %arg0, %c0_i32, %c0_i32_0 : i32, i32, i32
  }
}

</mosaic_0001>

<bundles_post_ra>
// kernel: tpu_custom_call.1
= control target key start
LH: loop header
LB: loop body
LE: loop exit
PB: predicated region body
PF: predicated region fallthrough
CT: control target
= control target key end

     0   :  { %18 = vsyncpa [#allocation3], 0  ;;  %s2416_s0 = inlined_call_operand.vmem [shape: f32[2,16,16], index: 0, kind: input, shape index: {}]   ;;  %s2417_s1 = inlined_call_operand.vmem [shape: f32[2,8,64], index: 1, kind: input, shape index: {}]   ;;  %s2418_s2 = inlined_call_operand.vmem [shape: f32[2,4,256], index: 2, kind: input, shape index: {}]   ;;  %s2419_s3 = inlined_call_operand.vmem [shape: f32[32,16], index: 3, kind: input, shape index: {}]   ;;  %s2420_s4 = inlined_call_operand.vmem [shape: f32[32,1], index: 4, kind: input, shape index: {}]   ;;  %s2421_s5 = inlined_call_operand.vmem [shape: f32[8,8], index: 5, kind: input, shape index: {}]   ;;  %s2422_s6 = inlined_call_operand.vmem [shape: f32[8,1], index: 6, kind: input, shape index: {}]   ;;  %s2423_s7 = inlined_call_operand.vmem [shape: f32[4,16,64], index: 7, kind: input, shape index: {}]   ;;  %s2424_s8 = inlined_call_operand.vmem [shape: f32[32,8], index: 8, kind: input, shape index: {}]   ;;  %s2425_s9 = inlined_call_operand.vmem [shape: f32[32,1], index: 9, kind: input, shape index: {}]   ;;  %s2426_s10 = inlined_call_operand.vmem [shape: f32[8,4], index: 10, kind: input, shape index: {}]   ;;  %s2427_s11 = inlined_call_operand.vmem [shape: f32[8,1], index: 11, kind: input, shape index: {}]   ;;  %s2428_s12 = inlined_call_operand.hbm [shape: f32[4,64,256], index: 12, kind: input, shape index: {}]   ;;  %s2429_s13 = inlined_call_operand.hbm [shape: f32[2,8,256], index: 13, kind: output, shape index: {}]  }
   0x1   :  { %19 = vsyncpa [#allocation4], 0 }
   0x2   :  { %21 = vsyncpa [#allocation4 + $0x1], 0  ;;  %s2150_s25 = smov 0   ;;  %s2152_s26 = smov 0  }
   0x3   :  { %s2154_s27 = smov 0   ;;  %s2156_s28 = smov 0  }
   0x4 LB: > { %2436 = sst [smem:[#allocation8_spill]] %s2066_s27  ;;  %s2171_s29 = sadd.s32 4294967295, %s2070_s28   ;;  %s2070_s28 = sphi %s2156_s28, %s2448_s28   ;;  %s2066_s27 = sphi %s2154_s27, %s2450_s27   ;;  %s2062_s26 = sphi %s2152_s26, %s2452_s26   ;;  %s2058_s25 = sphi %s2150_s25, %s2451_s25  }
   0x5   : > { %s1707_s30 = sadd.s32 4294967294, %s2070_s28   ;;  %s2175_s14 = sadd.s32 1, %s2070_s28  }
   0x6   : > { %2437 = sst [smem:[#allocation9_spill]] %s2175_s14  ;;  %s322_s15 = sadd.s32 1, %s2066_s27 }
   0x7   : > { %s319_s16 = ssub.s32 %s2070_s28, %s2175_s14  ;;  %p332_p0 = scmp.ne.s32.totalorder %s2066_s27, %s2062_s26 }
   0x8   : > { %p320_p1 = scmp.eq.s32.totalorder %s319_s16, 0  ;;  %p333_p2 = scmp.eq.s32.totalorder %s2171_s29, 1 }
   0x9   : > { %p338_p3 = scmp.ne.s32.totalorder %s2062_s26, %s2058_s25  ;;  %p339_p4 = scmp.eq.s32.totalorder %s1707_s30, 1 }
   0xa   : > { %s2186_s17 = scalar_select %p320_p1, %s2066_s27, %s322_s15  }
   0xb   : > { %p2188_p5 = por %p333_p2, %p332_p0  ;;  %p2192_p6 = por %p339_p4, %p338_p3 }
   0xc   : > { %2438 = sst [smem:[#allocation10_spill]] %s2186_s17  ;;  %p1708_p7 = scmp.ge.s32.totalorder %s2070_s28, 1 }
   0xd   : > { %s2439_s18 = scalar_select %p2188_p5, 1, 0 }
   0xe   : > { %s2440_s19 = scalar_select %p2192_p6, 1, 0 }
   0xf   : > { %p346_p8 = scmp.lt.s32.totalorder %s2070_s28, 3  ;;  %p2433_p9 = scmp.eq.s32.totalorder %s2171_s29, 0 }
  0x10   : > { %s2072_s21 = smov [#allocation2]   ;;  %s1976_s15 = scalar_lea.hbm %s2428_s12, 8192 }
  0x11   : > { %p2199_p10 = pnand %p1708_p7, %p346_p8  ;;  %s385_s22 = sshll.u32 %s2072_s21, 4  ;;  %s386_s22 = int_to_ptr.vmem [resolvable:$true] %s385_s22 }
  0x12   : > { %p1977_p13 = scmp.ne.s32.totalorder %s2428_s12, %s1976_s15  ;;  %p1983_p3 = scmp.lt.u32.totalorder %s1976_s15, %s2428_s12 }
  0x13   : > { %s2441_s20 = scalar_select %p2199_p10, 1, 0 }
  0x14   : > { %p1923_p11 = pneg %p2199_p10 }
  0x16   : > { %p2207_p12 = pnand %p2433_p9, %p1923_p11 }
  0x18   : > { %p1978_p0 = pneg %p2207_p12 }
  0x1a   : > { %p1979_p1 = pnand %p1978_p0, %p1977_p13 }
  0x1c   : > { %p1980_p2 = pneg %p1979_p1 }
  0x1e   : > { %p1985_p4 = pnand %p1983_p3, %p1980_p2 }
  0x20   : > { %1988 = shalt.err (!%p1985_p4)
}
  0x21   : > { %s1989_s14 = scalar_lea.vmem %s386_s22, 8192  ;;  %p1997_p9 = scmp.lt.s32.totalorder %s386_s22, %s386_s22 }
  0x22   : > { %p1990_p7 = scmp.ne.s32.totalorder %s386_s22, %s1989_s14  ;;  %p1998_p6 = scmp.lt.s32.totalorder %s1989_s14, %s1989_s14 }
  0x24   : > { %p1992_p8 = pnand %p1990_p7, %p1978_p0  ;;  %p1999_p5 = por %p1998_p6, %p1997_p9 }
  0x26   : > { %p1993_p11 = pneg %p1992_p8 }
  0x28   : > { %p2000_p10 = pnand %p1999_p5, %p1993_p11 }
  0x2a   : > { %2003 = shalt.err (!%p2000_p10)
}
  0x2b   : > { %s2073_s17 = smov 256   ;;  %s2074_s24 = smov 16  }
  0x2c   : > { %1926 = dma.hbm_to_vmem [thread:$0]  (!%p2207_p12), %s2428_s12, 8192, %s386_s22, [#allocation3], %s2073_s17, %s2073_s17, %s2074_s24  }
  0x2d   : > { %p2443_p13 = scmp.ne.s32.totalorder %s2441_s20, 0 }
  0x2e   : > { %p2444_p1 = scmp.eq.s32.totalorder (!%p2443_p13), %s2171_s29, 0 }
  0x2f   : > { %424 = sbr.rel (%p2443_p13) target bundleno = 984 (0x3d8), region = 72 }
  0x36   : > { %2049 = dma.done.wait (%p2444_p1), [#allocation3], 8192   ;;  %p2445_p0 = pmov %p2444_p1 }
  0x37   : > { %p477_p5 = scmp.lt.s32.totalorder %s2171_s29, 1  ;;  %v2075_v0 = vmov 0   ;;  %vm521_vm0 = vcmask 130048   ;;  %v493_v3 = vld [vmem:[%s2419_s3] sm:$0xff]  ;;  %v498_v5 = vld [vmem:[%s2420_s4 + $0x8] sm:$0xff]  ;;  %v499_v6 = vld [vmem:[%s2420_s4 + $0x10] sm:$0xff] }
  0x38   : > { %2051 = vsyncadd (%p2445_p0), [#allocation3], 4294959104  ;;  %1973 = vset.pattern.permute.xlu0 %v2075_v0  ;;  %1974 = vset.pattern.permute.xlu1 %v2075_v0  ;;  %v494_v7 = vld [vmem:[%s2419_s3 + $0x8] sm:$0xff]  ;;  %v497_v8 = vld [vmem:[%s2420_s4] sm:$0xff]  ;;  %v2076_v18 = vmov 0.0|0.0   ;;  %vm2077_vm1 = vmmov 0  }
  0x39   : > { %s2235_s27 = scalar_select %p477_p5, %s2171_s29, 1  ;;  %1782 = vmatprep.mubr.msk.f32.mxu0 %vm521_vm0, %v493_v3  ;;  %508 = vperm.xlu0 %1973, %v498_v5   ;;  %v495_v9 = vld [vmem:[%s2419_s3 + $0x10] sm:$0xff]  ;;  %v500_v10 = vld [vmem:[%s2420_s4 + $0x18] sm:$0xff]  ;;  %v1001_v12 = vld [vmem:[%s2422_s6] sm:$0xff]  ;;  %v2078_v22 = vmov 0.0   ;;  %vm926_vm2 = vcmask 64512  }
  0x3a   : > { %513 = vperm.xlu1 %1974, %v499_v6   ;;  %v496_v11 = vld [vmem:[%s2419_s3 + $0x18] sm:$0xff]  ;;  %v1014_v13 = vld [vmem:[%s2425_s9 + $0x10] sm:$0xff]  ;;  %v1013_v14 = vld [vmem:[%s2425_s9 + $0x8] sm:$0xff]  ;;  %1833 = vmatprep.subr.bf16.mxu1 %v2076_v18  ;;  %vm1166_vm3 = vcmask 523264   ;;  %vm1509_vm4 = vcmask 1043456   ;;  %vm1505_vm5 = vcmask 31744  }
  0x3b   : > { %s1750_s14 = sshll.u32 %s2235_s27, 4  ;;  %v1015_v15 = vld [vmem:[%s2425_s9 + $0x18] sm:$0xff]  ;;  %v1723_v16 = vld [vmem:[%s2423_s7 + $0x10] sm:$0xff]  ;;  %v1012_v20 = vld [vmem:[%s2425_s9] sm:$0xff]  ;;  %1792 = vmatprep.mubr.msk.f32.mxu1 %vm2077_vm1, %v2078_v22  ;;  %s1716_s15 = sshll.u32 %s2235_s27, 3 }
  0x3c   : > { %s481_s20 = scalar_lea.vmem %s2416_s0, %s1750_s14  ;;  %v1724_v17 = vld [vmem:[%s2423_s7 + $0x18] sm:$0xff]  ;;  %v1587_v21 = vld [vmem:[%s2427_s11] sm:$0xff]  ;;  %v1728_v24 = vld [vmem:[%s2423_s7 + $0x28] sm:$0xff]  ;;  %s485_s22 = scalar_lea.vmem %s2417_s1, %s1716_s15 }
  0x3d   : > { %v491_v1 = vld [vmem:[%s481_s20] sm:$0xff]  ;;  %v492_v2 = vld [vmem:[%s481_s20 + $0x8] sm:$0xff]  ;;  %503 = vperm.xlu0 %1973, %v497_v8   ;;  %v1834_v19 = vpack.c.bf16 %v1724_v17, %v1723_v16  ;;  %v1730_v33 = vld [vmem:[%s2423_s7 + $0x30] sm:$0xff]  ;;  %s490_s17 = scalar_lea.vmem %s2418_s2, %s1716_s15  ;;  %s474_s24 = sand.u32 1, %s2062_s26  }
  0x3e   : > { %v1829_v4 = vpack.c.bf16 %v492_v2, %v491_v1  ;;  %518 = vperm.xlu1 %1974, %v500_v10   ;;  %v1727_v23 = vld [vmem:[%s2423_s7 + $0x20] sm:$0xff]  ;;  %v620_v27 = vld [vmem:[%s2423_s7 + $0x8] sm:$0xff]  ;;  %v1731_v34 = vld [vmem:[%s2423_s7 + $0x38] sm:$0xff]  ;;  %s1713_s30 = sshll.u32 %s474_s24, 4  ;;  %s1752_s16 = sshll.u32 %s2171_s29, 8 }
  0x3f   : > { %1835 = vmatpush3.bf16.msra.mxu1 %v1834_v19  ;;  %v1840_v25 = vpack.c.bf16 %v1728_v24, %v1727_v23  ;;  %v619_v26 = vld [vmem:[%s2423_s7] sm:$0xff]  ;;  %v1843_v38 = vpack.c.bf16 %v1731_v34, %v1730_v33  ;;  %v1317_v47 = vld [vmem:[#allocation2 + $0x108] sm:$0xff]  ;;  %v1319_v48 = vld [vmem:[#allocation2 + $0x118] sm:$0xff]  ;;  %s476_s14 = scalar_lea.vmem [#allocation5], %s1713_s30  ;;  %s2374_s21 = scalar_lea.hbm %s2429_s13, %s1752_s16 }
  0x40   : > { %1830 = vmatprep.subr.bf16.mxu0 %v1829_v4  ;;  %1836 = vmatprep.subr.bf16.mxu1 %v2076_v18  ;;  %v1837_v30 = vpack.c.bf16 %v620_v27, %v619_v26  ;;  %v925_v42 = vld [vmem:[%s485_s22] sm:$0xff]  ;;  %v1318_v50 = vld [vmem:[#allocation2 + $0x110] sm:$0xff]  ;;  %v1877_v51 = vpack.c.bf16 %v1319_v48, %v1317_v47  ;;  %v1321_v53 = vld [vmem:[#allocation2 + $0x128] sm:$0xff]  ;;  %s1612_s22 = sshll.u32 %s476_s14, 4  ;;  %p2446_p9 = scmp.ne.s32.totalorder %s2439_s18, 0  ;;  %s2376_s22 = int_to_ptr.vmem [resolvable:$true] %s1612_s22 }
  0x41   : > { %1832 = vmatpush3.bf16.msra.mxu0 %v1829_v4  ;;  %1004 = vperm.xlu0 %1973, %v1001_v12   ;;  %v924_v45 = vld [vmem:[%s2421_s5] sm:$0xff]  ;;  %v1323_v54 = vld [vmem:[#allocation2 + $0x138] sm:$0xff]  ;;  %v1322_v57 = vld [vmem:[#allocation2 + $0x130] sm:$0xff]  ;;  %s2004_s29 = scalar_lea.vmem %s2376_s22, 256  ;;  %s2079_s27 = smov [#allocation5]  }
  0x42   : > { %1028 = vperm.xlu1 %1974, %v1014_v13   ;;  %1839 = vmatprep.subr.bf16.mxu0 %v2076_v18  ;;  %v1008_v46 = vld [vmem:[%s2424_s8] sm:$0xff]  ;;  %v1881_v55 = vpack.c.bf16 %v1323_v54, %v1321_v53  ;;  %v1325_v59 = vld [vmem:[#allocation2 + $0x148] sm:$0xff]  ;;  %v1327_v60 = vld [vmem:[#allocation2 + $0x158] sm:$0xff]  ;;  %p2005_p6 = scmp.ne.s32.totalorder %s2376_s22, %s2004_s29  ;;  %s2008_s15 = sshll.u32 %s2079_s27, 4  ;;  %s2009_s15 = int_to_ptr.vmem [resolvable:$false] %s2008_s15 }
  0x43   : > { %v1316_v49 = vld [vmem:[#allocation2 + $0x100] sm:$0xff]  ;;  %v1885_v61 = vpack.c.bf16 %v1327_v60, %v1325_v59  ;;  %v1153_v12 = vld [vmem:[#allocation2 + $0x98] sm:$0xff]  ;;  %v1155_v17 = vld [vmem:[#allocation2 + $0xa8] sm:$0xff]  ;;  %s2010_s30 = scalar_lea.vmem %s2009_s15, 512  ;;  %p2011_p2 = scmp.lt.s32.totalorder %s2376_s22, %s2009_s15 }
  0x44   : > { %1783 = vmatmul.mubr.msk.f32.vlgmr.msra.gmra.mrb[0].mxu0 %vm521_vm0, %v494_v7  ;;  %v1879_v52 = vpack.c.bf16 %v1318_v50, %v1316_v49  ;;  %v1320_v56 = vld [vmem:[#allocation2 + $0x120] sm:$0xff]  ;;  %v1010_v24 = vld [vmem:[%s2424_s8 + $0x10] sm:$0xff]  ;;  %v1329_v48 = vld [vmem:[#allocation2 + $0x168] sm:$0xff]  ;;  %p2006_p10 = pnand %p2005_p6, %p2446_p9  ;;  %p2012_p3 = scmp.lt.s32.totalorder %s2010_s30, %s2004_s29 }
  0x45   : > { %1785 = vmatprep.mubr.msk.f32.mxu0 %vm521_vm0, %v495_v9  ;;  %1023 = vperm.xlu0 %1973, %v1013_v14   ;;  %v1883_v58 = vpack.c.bf16 %v1322_v57, %v1320_v56  ;;  %v1150_v14 = vld [vmem:[#allocation2 + $0x80] sm:$0xff]  ;;  %v1156_v27 = vld [vmem:[#allocation2 + $0xb0] sm:$0xff]  ;;  %v1331_v49 = vld [vmem:[#allocation2 + $0x178] sm:$0xff] }
  0x46   : > { %1033 = vperm.xlu1 %1974, %v1015_v15   ;;  %1841 = vmatpush3.bf16.msra.mxu0 %v1840_v25  ;;  %v1152_v15 = vld [vmem:[#allocation2 + $0x90] sm:$0xff]  ;;  %v1154_v26 = vld [vmem:[#allocation2 + $0xa0] sm:$0xff]  ;;  %v1889_v50 = vpack.c.bf16 %v1331_v49, %v1329_v48  ;;  %v1410_v54 = vld [vmem:[#allocation2 + $0x188] sm:$0xff]  ;;  %p2007_p12 = pneg %p2006_p10  ;;  %p2013_p4 = por %p2012_p3, %p2011_p2 }
  0x47   : > { %1816 = vmatprep.subr.mxu0 %v2078_v22  ;;  %v1847_v23 = vpack.c.bf16 %v1152_v15, %v1150_v14  ;;  %v1158_v33 = vld [vmem:[#allocation2 + $0xc0] sm:$0xff]  ;;  %v1160_v34 = vld [vmem:[#allocation2 + $0xd0] sm:$0xff]  ;;  %v1138_v59 = vld [vmem:[#allocation2 + $0x28] sm:$0xff] }
  0x48   : > { %1786 = vmatmul.mubr.msk.f32.gmra.mrb[2].mxu0 %vm521_vm0, %v496_v11  ;;  %v1151_v11 = vld [vmem:[#allocation2 + $0x88] sm:$0xff]  ;;  %v1133_v57 = vld [vmem:[#allocation2] sm:$0xff]  ;;  %v1140_v60 = vld [vmem:[#allocation2 + $0x38] sm:$0xff]  ;;  %p2014_p7 = pnand %p2013_p4, %p2007_p12 }
  0x49   : > { %1018 = vperm.xlu0 %1973, %v1012_v20   ;;  %1806 = vmatprep.mubr.msk.f32.mxu0 %vm2077_vm1, %v2078_v22  ;;  %v1845_v20 = vpack.c.bf16 %v1153_v12, %v1151_v11 }
  0x4a   : > { %1590 = vperm.xlu1 %1974, %v1587_v21   ;;  %v1009_v21 = vld [vmem:[%s2424_s8 + $0x8] sm:$0xff] }
  0xb8   : > { %v509_v28 = vpop.permute.xlu0 %508 }
  0xb9   : > { %v514_v35 = vpop.permute.xlu1 %513 }
  0xbc   : > { %v504_v36 = vpop.permute.xlu0 %503 }
  0xbd   : > { %v519_v43 = vpop.permute.xlu1 %518 }
  0xc0   : > { %v1005_v16 = vpop.permute.xlu0 %1004 }
 0x117   : > { %v1784_v29 = vpop.f32.mrb[0].mxu0 }
 0x118   : > { %v606_v31 = vadd.f32 %v1784_v29, %v509_v28  ;;  %v600_v32 = vpop.f32.mrb[1].mxu0  ;;  %v1159_v28 = vld [vmem:[#allocation2 + $0xc8] sm:$0xff]  ;;  %v1161_v29 = vld [vmem:[#allocation2 + $0xd8] sm:$0xff] }
 0x119   : > { %v601_v39 = vadd.f32 %v600_v32, %v504_v36  ;;  %v1853_v32 = vpack.c.bf16 %v1161_v29, %v1159_v28  ;;  %v1165_v36 = vld [vmem:[#allocation2 + $0xf8] sm:$0xff] }
 0x11a   : > { %1793 = vmatmul.mubr.msk.f32.vlgmr.msra.gmra.mrb[0].mxu1 %vm521_vm0, %v606_v31  ;;  %v1851_v31 = vpack.c.bf16 %v1156_v27, %v1154_v26  ;;  %v1418_v26 = vld [vmem:[#allocation2 + $0x1c8] sm:$0xff]  ;;  %v1420_v27 = vld [vmem:[#allocation2 + $0x1d8] sm:$0xff] }
 0x11b   : > { %v1787_v37 = vpop.f32.mrb[2].mxu0  ;;  %1838 = vmatpush3.bf16.msra.mxu1 %v1837_v30  ;;  %1799 = vmatprep.mubr.msk.f32.mxu1 %vm2077_vm1, %v2078_v22  ;;  %v1011_v30 = vld [vmem:[%s2424_s8 + $0x18] sm:$0xff] }
 0x11c   : > { %v610_v40 = vpop.f32.mrb[3].mxu0  ;;  %1842 = vmatprep.subr.bf16.mxu1 %v2076_v18  ;;  %v616_v44 = vadd.f32 %v1787_v37, %v519_v43  ;;  %v1157_v18 = vld [vmem:[#allocation2 + $0xb8] sm:$0xff]  ;;  %v1855_v37 = vpack.c.bf16 %v1160_v34, %v1158_v33  ;;  %v1326_v43 = vld [vmem:[#allocation2 + $0x150] sm:$0xff]  ;;  %v1901_v33 = vpack.c.bf16 %v1420_v27, %v1418_v26  ;;  %v1417_v34 = vld [vmem:[#allocation2 + $0x1c0] sm:$0xff] }
 0x11d   : > { %v611_v41 = vadd.f32 %v610_v40, %v514_v35  ;;  %v1849_v25 = vpack.c.bf16 %v1157_v18, %v1155_v17  ;;  %v1163_v35 = vld [vmem:[#allocation2 + $0xe8] sm:$0xff]  ;;  %v1164_v40 = vld [vmem:[#allocation2 + $0xf0] sm:$0xff]  ;;  %v1141_v17 = vld [vmem:[#allocation2 + $0x40] sm:$0xff] }
 0x11e   : > { %1800 = vmatmul.mubr.msk.f32.vlgmr.msra.gmra.mrb[2].mxu1 %vm521_vm0, %v601_v39  ;;  %v1162_v39 = vld [vmem:[#allocation2 + $0xe0] sm:$0xff]  ;;  %v1143_v18 = vld [vmem:[#allocation2 + $0x50] sm:$0xff] }
 0x11f   : > { %1807 = vmatmul.mubr.msk.f32.vlgmr.msra.gmra.mrb[4].mxu0 %vm521_vm0, %v611_v41  ;;  %1844 = vmatpush3.bf16.msra.mxu1 %v1843_v38  ;;  %v1857_v38 = vpack.c.bf16 %v1165_v36, %v1163_v35  ;;  %v1859_v41 = vpack.c.bf16 %v1164_v40, %v1162_v39  ;;  %v1871_v28 = vpack.c.bf16 %v1143_v18, %v1141_v17  ;;  %v1419_v35 = vld [vmem:[#allocation2 + $0x1d0] sm:$0xff]  ;;  %v1422_v36 = vld [vmem:[#allocation2 + $0x1e8] sm:$0xff] }
 0x120   : > { %1813 = vmatprep.mubr.msk.f32.mxu1 %vm2077_vm1, %v2078_v22  ;;  %1817 = vmatpush3.msra.mxu0 %v925_v42  ;;  %v1324_v42 = vld [vmem:[#allocation2 + $0x140] sm:$0xff]  ;;  %v1903_v39 = vpack.c.bf16 %v1419_v35, %v1417_v34 }
 0x121   : > { %1818 = vmatprep.mubr.msk.f32.mxu0 %vm2077_vm1, %v2078_v22  ;;  %1878 = vmatprep.subr.bf16.mxu0 %v1877_v51  ;;  %v1328_v51 = vld [vmem:[#allocation2 + $0x160] sm:$0xff] }
 0x122   : > { %1814 = vmatmul.mubr.msk.f32.vlgmr.msra.gmra.mrb[4].mxu1 %vm521_vm0, %v616_v44  ;;  %v1887_v44 = vpack.c.bf16 %v1326_v43, %v1324_v42  ;;  %v1423_v42 = vld [vmem:[#allocation2 + $0x1f0] sm:$0xff]  ;;  %v1502_v43 = vld [vmem:[%s490_s17] sm:$0xff]  ;;  %s1598_s17 = scalar_lea.sflag [#allocation4], %s474_s24 }
 0x123   : > { %1819 = vmatmul.mubr.msk.f32.vlgmr.msra.gmra.mrb[6].mxu0 %vm926_vm2, %v924_v45  ;;  %1823 = vmatprep.mubr.msk.f32.mxu1 %vm926_vm2, %v1008_v46  ;;  %v1134_v45 = vld [vmem:[#allocation2 + $0x8] sm:$0xff]  ;;  %v1136_v46 = vld [vmem:[#allocation2 + $0x18] sm:$0xff] }
 0x124   : > { %1399 = vmatprep.mubr.f32.mxu0 %v2078_v22  ;;  %1880 = vmatpush1.bf16.msra.mxu0 %v1879_v52  ;;  %v1861_v47 = vpack.c.bf16 %v1136_v46, %v1134_v45  ;;  %v1330_v52 = vld [vmem:[#allocation2 + $0x170] sm:$0xff] }
 0x125   : > { %1882 = vmatprep.subr.bf16.mxu0 %v1881_v55  ;;  %v1891_v53 = vpack.c.bf16 %v1330_v52, %v1328_v51  ;;  %v1412_v55 = vld [vmem:[#allocation2 + $0x198] sm:$0xff] }
 0x126   : > { %v1893_v56 = vpack.c.bf16 %v1412_v55, %v1410_v54 }
 0x128   : > { %1884 = vmatpush1.bf16.msra.mxu0 %v1883_v58  ;;  %v1135_v58 = vld [vmem:[#allocation2 + $0x10] sm:$0xff] }
 0x129   : > { %1886 = vmatprep.subr.bf16.mxu0 %v1885_v61  ;;  %v1024_v61 = vpop.permute.xlu0 %1023 }
 0x12c   : > { %1888 = vmatpush1.bf16.msra.mxu0 %v1887_v44 }
 0x12d   : > { %1890 = vmatprep.subr.bf16.mxu0 %v1889_v50  ;;  %v1019_v44 = vpop.permute.xlu0 %1018  ;;  %v1501_v50 = vld [vmem:[%s2426_s10] sm:$0xff] }
 0x130   : > { %1892 = vmatpush1.bf16.msra.mxu0 %v1891_v53 }
 0x131   : > { %1894 = vmatprep.subr.bf16.mxu0 %v1893_v56 }
 0x1ed   : > { %v693_v62 = vpop.f32.mrb[0].mxu1 }
 0x1ee   : > { %v1794_v63 = vpop.f32.mrb[1].mxu1 }
 0x1ef   : > { %v1863_v63 = vpack.c.bf16 %v1135_v58, %v1133_v57 }
 0x1f1   : > { %v766_v0 = vpop.f32.mrb[2].mxu1 }
 0x1f2   : > { %v767_v1 = vadd.f32 %v766_v0, %v693_v62  ;;  %v1801_v2 = vpop.f32.mrb[3].mxu1  ;;  %v842_v3 = vpop.f32.mrb[4].mxu0 }
 0x1f3   : > { %v1808_v4 = vpop.f32.mrb[5].mxu0  ;;  %v1865_v2 = vpack.c.bf16 %v1140_v60, %v1138_v59 }
 0x1f4   : > { %v846_v5 = vadd.f32 %v842_v3, %v767_v1  ;;  %v1137_v3 = vld [vmem:[#allocation2 + $0x20] sm:$0xff]  ;;  %v1139_v4 = vld [vmem:[#allocation2 + $0x30] sm:$0xff] }
 0x1f5   : > { %v919_v6 = vpop.f32.mrb[4].mxu1  ;;  %v1867_v12 = vpack.c.bf16 %v1139_v4, %v1137_v3 }
 0x1f6   : > { %v923_v7 = vadd.f32 %v919_v6, %v846_v5  ;;  %v1815_v8 = vpop.f32.mrb[5].mxu1  ;;  %v996_v9 = vpop.f32.mrb[6].mxu0  ;;  %v1409_v5 = vld [vmem:[#allocation2 + $0x180] sm:$0xff]  ;;  %v1411_v6 = vld [vmem:[#allocation2 + $0x190] sm:$0xff] }
 0x1f7   : > { %v1820_v10 = vpop.f32.mrb[7].mxu0  ;;  %v1144_v8 = vld [vmem:[#allocation2 + $0x58] sm:$0xff]  ;;  %v1895_v15 = vpack.c.bf16 %v1411_v6, %v1409_v5 }
 0x1f8   : > { %v1000_v13 = vadd.f32 %v996_v9, %v923_v7  ;;  %v1142_v7 = vld [vmem:[#allocation2 + $0x48] sm:$0xff]  ;;  %v1416_v10 = vld [vmem:[#allocation2 + $0x1b8] sm:$0xff] }
 0x1f9   : > { %v1414_v9 = vld [vmem:[#allocation2 + $0x1a8] sm:$0xff] }
 0x1fa   : > { %v1007_v19 = vadd.f32 %v1005_v16, %v1000_v13  ;;  %v1029_v13 = vpop.permute.xlu1 %1028  ;;  %v1869_v16 = vpack.c.bf16 %v1144_v8, %v1142_v7 }
 0x1fc   : > { %1821 = vmatprep.subr.mxu1 %v1007_v19 }
 0x1fd   : > { %1822 = vmatpush3.msra.mxu1 %v1007_v19  ;;  %v1413_v19 = vld [vmem:[#allocation2 + $0x1a0] sm:$0xff] }
 0x1fe   : > { %1824 = vmatmul.mubr.msk.f32.vlgmr.msra.gmra.mrb[6].mxu1 %vm926_vm2, %v1009_v21  ;;  %1846 = vmatprep.subr.bf16.mxu1 %v1845_v20  ;;  %v1897_v21 = vpack.c.bf16 %v1416_v10, %v1414_v9  ;;  %v1034_v48 = vpop.permute.xlu1 %1033 }
 0x1ff   : > { %1826 = vmatprep.mubr.msk.f32.mxu1 %vm926_vm2, %v1010_v24  ;;  %1848 = vmatpush1.bf16.msra.mxu1 %v1847_v23  ;;  %v1415_v23 = vld [vmem:[#allocation2 + $0x1b0] sm:$0xff]  ;;  %v1146_v24 = vld [vmem:[#allocation2 + $0x68] sm:$0xff] }
 0x200   : > { %1850 = vmatprep.subr.bf16.mxu1 %v1849_v25  ;;  %v1148_v25 = vld [vmem:[#allocation2 + $0x78] sm:$0xff]  ;;  %v1899_v29 = vpack.c.bf16 %v1415_v23, %v1413_v19 }
 0x202   : > { %1827 = vmatmul.mubr.msk.f32.gmra.mrb[8].mxu1 %vm926_vm2, %v1011_v30  ;;  %v1873_v30 = vpack.c.bf16 %v1148_v25, %v1146_v24  ;;  %v1591_v56 = vpop.permute.xlu1 %1590 }
 0x203   : > { %1852 = vmatpush1.bf16.msra.mxu1 %v1851_v31  ;;  %1234 = vmatprep.mubr.f32.mxu1 %v2078_v22  ;;  %v1145_v31 = vld [vmem:[#allocation2 + $0x60] sm:$0xff] }
 0x204   : > { %1854 = vmatprep.subr.bf16.mxu1 %v1853_v32  ;;  %v1147_v32 = vld [vmem:[#allocation2 + $0x70] sm:$0xff] }
 0x207   : > { %1856 = vmatpush1.bf16.msra.mxu1 %v1855_v37  ;;  %v1424_v37 = vld [vmem:[#allocation2 + $0x1f8] sm:$0xff] }
 0x208   : > { %1858 = vmatprep.subr.bf16.mxu1 %v1857_v38  ;;  %v1875_v38 = vpack.c.bf16 %v1147_v32, %v1145_v31  ;;  %v1905_v40 = vpack.c.bf16 %v1424_v37, %v1422_v36 }
 0x20b   : > { %1860 = vmatpush1.bf16.msra.mxu1 %v1859_v41  ;;  %v1421_v41 = vld [vmem:[#allocation2 + $0x1e0] sm:$0xff] }
 0x20c   : > { %1862 = vmatprep.subr.bf16.mxu1 %v1861_v47  ;;  %v1907_v46 = vpack.c.bf16 %v1423_v42, %v1421_v41  ;;  %v1504_v47 = vcombine.high %v1502_v43, %v1502_v43 }
 0x2d1   : > { %v1825_v62 = vpop.f32.mrb[6].mxu1 }
 0x2d2   : > { %v1120_v0 = vadd.f32 %v1825_v62, %v1024_v61  ;;  %v1114_v1 = vpop.f32.mrb[7].mxu1 }
 0x2d3   : > { %v1115_v45 = vadd.f32 %v1114_v1, %v1019_v44 }
 0x2d4   : > { %1738 = vmatmul.mubr.msk.f32.vlgmr.msra.gmra.mrb[10].mxu1 %vm1166_vm3, %v1120_v0 }
 0x2d5   : > { %1864 = vmatpush1.bf16.msra.mxu1 %v1863_v63  ;;  %v1828_v11 = vpop.f32.mrb[8].mxu1  ;;  %1308 = vmatprep.mubr.f32.mxu1 %v2078_v22 }
 0x2d6   : > { %v1124_v14 = vpop.f32.mrb[9].mxu1  ;;  %1866 = vmatprep.subr.bf16.mxu1 %v1865_v2  ;;  %v1130_v49 = vadd.f32 %v1828_v11, %v1034_v48 }
 0x2d7   : > { %v1125_v20 = vadd.f32 %v1124_v14, %v1029_v13 }
 0x2d9   : > { %1868 = vmatpush1.bf16.msra.mxu1 %v1867_v12  ;;  %1740 = vmatmul.mubr.msk.f32.vlgmr.msra.gmra.mrb[8].mxu0 %vm1166_vm3, %v1125_v20 }
 0x2da   : > { %1896 = vmatpush1.bf16.msra.mxu0 %v1895_v15  ;;  %1870 = vmatprep.subr.bf16.mxu1 %v1869_v16 }
 0x2db   : > { %1898 = vmatprep.subr.bf16.mxu0 %v1897_v21  ;;  %1492 = vmatprep.mubr.f32.mxu0 %v2078_v22 }
 0x2dd   : > { %1872 = vmatpush1.bf16.msra.mxu1 %v1871_v28 }
 0x2de   : > { %1900 = vmatpush1.bf16.msra.mxu0 %v1899_v29  ;;  %1874 = vmatprep.subr.bf16.mxu1 %v1873_v30 }
 0x2df   : > { %1902 = vmatprep.subr.bf16.mxu0 %v1901_v33 }
 0x2e1   : > { %1876 = vmatpush1.bf16.msra.mxu1 %v1875_v38 }
 0x2e2   : > { %1904 = vmatpush1.bf16.msra.mxu0 %v1903_v39 }
 0x2e3   : > { %1906 = vmatprep.subr.bf16.mxu0 %v1905_v40 }
 0x2e4   : > { %1739 = vmatmul.mubr.msk.f32.vlgmr.msra.gmra.mrb[10].mxu1 %vm1166_vm3, %v1115_v45 }
 0x2e6   : > { %1908 = vmatpush1.bf16.msra.mxu0 %v1907_v46 }
 0x2e7   : > { %1742 = vmatprep.subr.msk.mxu0 %vm1509_vm4, %v1504_v47 }
 0x2e9   : > { %1741 = vmatmul.mubr.msk.f32.vlgmr.msra.gmra.mrb[8].mxu0 %vm1166_vm3, %v1130_v49 }
 0x2ea   : > { %1743 = vmatpush1.msk.msra.mxu0 %vm1509_vm4, %v1502_v43  ;;  %1578 = vmatprep.mubr.f32.mxu0 %v2078_v22 }
 0x2f1   : > { %1744 = vmatmul.mubr.msk.f32.vlgmr.msra.gmra.mrb[8].mxu0 %vm1505_vm5, %v1501_v50 }
 0x3b7   : > { %v1310_v51 = vpop.f32.mrb[10].mxu1 }
 0x3b8   : > { %v1312_v52 = vpop.f32.mrb[11].mxu1 }
 0x3c4   : > { %v1580_v53 = vpop.f32.mrb[8].mxu0 }
 0x3c5   : > { %v1909_v54 = vadd.f32 %v1580_v53, %v1310_v51  ;;  %v1582_v55 = vpop.f32.mrb[9].mxu0 }
 0x3c6   : > { %v1910_v57 = vadd.f32 %v1582_v55, %v1312_v52 }
 0x3c7   : > { %v1593_v22 = vadd.f32 %v1909_v54, %v1591_v56 }
 0x3c8   : > { %v1594_v58 = vadd.f32 %v1910_v57, %v1591_v56 }
 0x3c9   : > { %1595 = vst [vmem:[%s476_s14] sm:$0xff] %v1593_v22 }
 0x3ca   : > { %1596 = vst [vmem:[%s476_s14 + $0x8] sm:$0xff] %v1594_v58 }
 0x3cb   : > { %2017 = shalt.err (!%p2014_p7)
}
 0x3cc   : > { %s2018_s24 = scalar_lea.hbm %s2374_s21, 256  ;;  %s2022_s23 = scalar_lea.hbm %s2429_s13, 512 }
 0x3cd   : > { %p2019_p8 = scmp.ne.s32.totalorder %s2374_s21, %s2018_s24  ;;  %p2023_p1 = scmp.lt.u32.totalorder %s2374_s21, %s2429_s13 }
 0x3ce   : > { %p2024_p0 = scmp.lt.u32.totalorder %s2022_s23, %s2018_s24  ;;  %p2026_p6 = scmp.lt.u32.totalorder %s2018_s24, %s2374_s21 }
 0x3cf   : > { %p2020_p11 = pnand %p2019_p8, %p2446_p9 }
 0x3d0   : > { %p2025_p5 = por %p2024_p0, %p2023_p1 }
 0x3d1   : > { %p2021_p13 = pneg %p2020_p11 }
 0x3d2   : > { %p2027_p10 = por %p2026_p6, %p2025_p5 }
 0x3d4   : > { %p2028_p12 = pnand %p2027_p10, %p2021_p13 }
 0x3d6   : > { %2031 = shalt.err (!%p2028_p12)
}
 0x3d7   : > { %1921 = dma.vmem_to_hbm [thread:$0]  (%p2446_p9), %s2376_s22, 256, %s2374_s21, %s1598_s17  }
 0x3d8 PF: > { %p1933_p2 = scmp.ge.s32.totalorder %s2070_s28, 2  ;;  %s1624_s29 = sand.u32 1, %s2058_s25  }
 0x3d9   : > { %p2447_p3 = scmp.ne.s32.totalorder %s2440_s19, 0  ;;  %s1625_s15 = scalar_lea.sflag [#allocation4], %s1624_s29 }
 0x3db   : > { %p1928_p4 = pnand %p1933_p2, %p2447_p3 }
 0x3dd   : > { %2053 = dma.done.wait (!%p1928_p4), %s1625_s15, 256  }
 0x3de   : > { %2055 = vsyncadd (!%p1928_p4), %s1625_s15, 4294967040  ;;  %s2448_s28 = sld [smem:[#allocation9_spill]]  ;;  %s2449_s30 = sld [smem:[#allocation8_spill]] }
 0x3df   : > { %s2450_s27 = sld [smem:[#allocation10_spill]]  ;;  %s2451_s25 = smov %s2062_s26 }
 0x3e4   : > { %p24_p7 = scmp.ge.s32.totalorder %s2448_s28, 4   ;;  %s2452_s26 = smov %s2449_s30 }
 0x3e6   :  { %26 = sbr.rel (!%p24_p7) target bundleno = 4 (0x4), region = 124 }
 0x3ed   :  { %1630 = vsyncpa [#allocation3], 1 }
 0x3ee   :  { %1632 = vsyncpa [#allocation3 + $0x1], 1 }
 0x3ef   :  { %1633 = vsyncpa [#allocation4], 1 }
 0x3f0   :  { %1635 = vsyncpa [#allocation4 + $0x1], 1 }

</bundles_post_ra>
